<compile_context>
chip_gen: v5e
topology: v5e:2x2
jax: 0.10.0
libtpu: 0.0.40
codegen_flags: <defaults>
</compile_context>

<pallas_src>
import functools
import math

import jax
import jax.numpy as jnp
from jax.experimental import pallas as pl
from jax.experimental.pallas import tpu as pltpu

INF = 100000000.0  # matches the PyTorch module's masked_fill constant


# ------------------------------ projections ---------------------------------

def _qkv_projection_kernel(xq_ref, xk_ref, xv_ref,
                           wq_ref, wk_ref, wv_ref,
                           bq_ref, bk_ref, bv_ref,
                           q_ref, k_ref, v_ref):
    q_ref[...] = (jnp.dot(xq_ref[...], wq_ref[...],
                          preferred_element_type=jnp.float32)
                  + bq_ref[...]).astype(q_ref.dtype)
    k_ref[...] = (jnp.dot(xk_ref[...], wk_ref[...],
                          preferred_element_type=jnp.float32)
                  + bk_ref[...]).astype(k_ref.dtype)
    v_ref[...] = (jnp.dot(xv_ref[...], wv_ref[...],
                          preferred_element_type=jnp.float32)
                  + bv_ref[...]).astype(v_ref.dtype)


def qkv_projection(xq, xk, xv, wq, bq, wk, bk, wv, bv, *, block_m=256):
    """Fused Q/K/V linear projections. x*: (M, D); w*: (D, D); b*: (D,)."""
    M, D = xq.shape
    bm = block_m if (M % block_m == 0) else M
    x_spec = pl.BlockSpec((bm, D), lambda i: (i, 0))
    w_spec = pl.BlockSpec((D, D), lambda i: (0, 0))
    b_spec = pl.BlockSpec((1, D), lambda i: (0, 0))
    o_spec = pl.BlockSpec((bm, D), lambda i: (i, 0))
    out_sd = jax.ShapeDtypeStruct((M, D), jnp.float32)
    return pl.pallas_call(
        _qkv_projection_kernel,
        out_shape=(out_sd, out_sd, out_sd),
        grid=(M // bm,),
        in_specs=[x_spec, x_spec, x_spec,
                  w_spec, w_spec, w_spec,
                  b_spec, b_spec, b_spec],
        out_specs=(o_spec, o_spec, o_spec),
        compiler_params=pltpu.CompilerParams(dimension_semantics=("parallel",)),
    )(xq, xk, xv, wq, wk, wv,
      bq.reshape(1, D), bk.reshape(1, D), bv.reshape(1, D))


def _linear_kernel(x_ref, w_ref, b_ref, o_ref):
    o_ref[...] = (jnp.dot(x_ref[...], w_ref[...],
                          preferred_element_type=jnp.float32)
                  + b_ref[...]).astype(o_ref.dtype)


def linear(x, w, b, *, block_m=256):
    """x: (M, K) @ w: (K, N) + b: (N,) -> (M, N)."""
    M, K = x.shape
    _, N = w.shape
    bm = block_m if (M % block_m == 0) else M
    return pl.pallas_call(
        _linear_kernel,
        out_shape=jax.ShapeDtypeStruct((M, N), jnp.float32),
        grid=(M // bm,),
        in_specs=[pl.BlockSpec((bm, K), lambda i: (i, 0)),
                  pl.BlockSpec((K, N), lambda i: (0, 0)),
                  pl.BlockSpec((1, N), lambda i: (0, 0))],
        out_specs=pl.BlockSpec((bm, N), lambda i: (i, 0)),
        compiler_params=pltpu.CompilerParams(dimension_semantics=("parallel",)),
    )(x, w, b.reshape(1, N))


# ------------------------------- attention -----------------------------------

def _attention_math(q, k, v, scale, mask=None):
    # q: (Sq, hd), k/v: (Sk, hd) -> (Sq, hd)
    s = jax.lax.dot_general(q, k, (((1,), (1,)), ((), ())),
                            preferred_element_type=jnp.float32) * scale
    if mask is not None:
        s = jnp.where(mask == 0, -INF, s)
    m = jnp.max(s, axis=-1, keepdims=True)
    p = jnp.exp(s - m)
    l = jnp.sum(p, axis=-1, keepdims=True)
    attn = p / l
    # TODO(synk): attention-probability dropout (p=0.1, stochastic) omitted —
    # inference semantics (identity).
    return jnp.dot(attn, v, preferred_element_type=jnp.float32)


def _attention_kernel(q_ref, k_ref, v_ref, o_ref, *, scale):
    o_ref[0, 0] = _attention_math(
        q_ref[0, 0], k_ref[0, 0], v_ref[0, 0], scale).astype(o_ref.dtype)


def _attention_kernel_masked(q_ref, k_ref, v_ref, mask_ref, o_ref, *, scale):
    o_ref[0, 0] = _attention_math(
        q_ref[0, 0], k_ref[0, 0], v_ref[0, 0], scale,
        mask=mask_ref[0, 0]).astype(o_ref.dtype)


def attention(qh, kh, vh, mask=None):
    """qh: (B, H, Sq, hd); kh/vh: (B, H, Sk, hd); mask broadcastable to (B,1,Sq,Sk)."""
    B, H, Sq, hd = qh.shape
    Sk = kh.shape[2]
    scale = 1.0 / math.sqrt(hd)
    q_spec = pl.BlockSpec((1, 1, Sq, hd), lambda b, h: (b, h, 0, 0))
    kv_spec = pl.BlockSpec((1, 1, Sk, hd), lambda b, h: (b, h, 0, 0))
    o_spec = pl.BlockSpec((1, 1, Sq, hd), lambda b, h: (b, h, 0, 0))
    out_sd = jax.ShapeDtypeStruct((B, H, Sq, hd), jnp.float32)
    cparams = pltpu.CompilerParams(dimension_semantics=("parallel", "parallel"))

    if mask is None:
        return pl.pallas_call(
            functools.partial(_attention_kernel, scale=scale),
            out_shape=out_sd,
            grid=(B, H),
            in_specs=[q_spec, kv_spec, kv_spec],
            out_specs=o_spec,
            compiler_params=cparams,
        )(qh, kh, vh)

    mask_b = jnp.broadcast_to(mask, (B, 1, Sq, Sk)).astype(jnp.int32)
    m_spec = pl.BlockSpec((1, 1, Sq, Sk), lambda b, h: (b, 0, 0, 0))
    return pl.pallas_call(
        functools.partial(_attention_kernel_masked, scale=scale),
        out_shape=out_sd,
        grid=(B, H),
        in_specs=[q_spec, kv_spec, kv_spec, m_spec],
        out_specs=o_spec,
        compiler_params=cparams,
    )(qh, kh, vh, mask_b)


# ------------------------------- full forward --------------------------------

def multi_head_attention_forward(query, key, value, params, num_heads, mask=None):
    """Pallas forward of MultiHeadAttentionLayer.

    query: (B, Sq, D); key/value: (B, Sk, D).
    params: dict with 'wq','wk','wv','wo' of shape (D, D) (applied as x @ W)
    and 'bq','bk','bv','bo' of shape (D,).
    """
    B, Sq, D = query.shape
    Sk = key.shape[1]
    assert D % num_heads == 0, "dimensions must be divisible by num_heads"
    hd = D // num_heads

    if Sq == Sk:
        qp, kp, vp = qkv_projection(
            query.reshape(B * Sq, D), key.reshape(B * Sk, D),
            value.reshape(B * Sk, D),
            params["wq"], params["bq"], params["wk"], params["bk"],
            params["wv"], params["bv"])
    else:  # cross-attention with differing lengths -> separate projections
        qp = linear(query.reshape(B * Sq, D), params["wq"], params["bq"])
        kp = linear(key.reshape(B * Sk, D), params["wk"], params["bk"])
        vp = linear(value.reshape(B * Sk, D), params["wv"], params["bv"])

    def split_heads(x, S):
        return x.reshape(B, S, num_heads, hd).transpose(0, 2, 1, 3)

    qh = split_heads(qp, Sq)
    kh = split_heads(kp, Sk)
    vh = split_heads(vp, Sk)

    ctx = attention(qh, kh, vh, mask=mask)                   # (B, H, Sq, hd)
    merged = ctx.transpose(0, 2, 1, 3).reshape(B * Sq, D)    # concat heads
    out = linear(merged, params["wo"], params["bo"])         # output projection
    return out.reshape(B, Sq, D)


# ------------------------------- reference -----------------------------------

def mha_reference(query, key, value, params, num_heads, mask=None):
    B, Sq, D = query.shape
    Sk = key.shape[1]
    hd = D // num_heads
    qp = query @ params["wq"] + params["bq"]
    kp = key @ params["wk"] + params["bk"]
    vp = value @ params["wv"] + params["bv"]

    def split(x, S):
        return x.reshape(B, S, num_heads, hd).transpose(0, 2, 1, 3)

    qh, kh, vh = split(qp, Sq), split(kp, Sk), split(vp, Sk)
    scores = jnp.einsum("bhqd,bhkd->bhqk", qh, kh) / math.sqrt(hd)
    if mask is not None:
        scores = jnp.where(mask == 0, -INF, scores)
    attn = jax.nn.softmax(scores, axis=-1)
    ctx = jnp.einsum("bhqk,bhkd->bhqd", attn, vh)
    merged = ctx.transpose(0, 2, 1, 3).reshape(B, Sq, D)
    return merged @ params["wo"] + params["bo"]


if __name__ == "__main__":
    batch, seq, dims, heads = 2, 8, 32, 4

    key = jax.random.PRNGKey(0)
    ks = jax.random.split(key, 11)
    wscale = 1.0 / math.sqrt(dims)
    params = {
        "wq": jax.random.normal(ks[0], (dims, dims), jnp.float32) * wscale,
        "wk": jax.random.normal(ks[1], (dims, dims), jnp.float32) * wscale,
        "wv": jax.random.normal(ks[2], (dims, dims), jnp.float32) * wscale,
        "wo": jax.random.normal(ks[3], (dims, dims), jnp.float32) * wscale,
        "bq": jax.random.normal(ks[4], (dims,), jnp.float32) * 0.1,
        "bk": jax.random.normal(ks[5], (dims,), jnp.float32) * 0.1,
        "bv": jax.random.normal(ks[6], (dims,), jnp.float32) * 0.1,
        "bo": jax.random.normal(ks[7], (dims,), jnp.float32) * 0.1,
    }
    q_in = jax.random.normal(ks[8], (batch, seq, dims), jnp.float32)
    k_in = jax.random.normal(ks[9], (batch, seq, dims), jnp.float32)
    v_in = jax.random.normal(ks[10], (batch, seq, dims), jnp.float32)

    # Unmasked forward (mask=None, the module's default).
    out = multi_head_attention_forward(q_in, k_in, v_in, params, heads, mask=None)
    out = jax.block_until_ready(out)
    ref = mha_reference(q_in, k_in, v_in, params, heads, mask=None)
    assert out.shape == (batch, seq, dims)
    assert jnp.allclose(out, ref, atol=1e-4, rtol=1e-4), "unmasked mismatch vs reference"

    # Masked forward (causal mask) exercising the masked_fill(-INF) path.
    causal = jnp.tril(jnp.ones((seq, seq), jnp.int32)).reshape(1, 1, seq, seq)
    out_m = multi_head_attention_forward(q_in, k_in, v_in, params, heads, mask=causal)
    out_m = jax.block_until_ready(out_m)
    ref_m = mha_reference(q_in, k_in, v_in, params, heads, mask=causal)
    assert jnp.allclose(out_m, ref_m, atol=1e-4, rtol=1e-4), "masked mismatch vs reference"

    print("KERNEL_OK")
</pallas_src>

<mosaic_0001>
module attributes {stable_mosaic.version = 11 : i64} {
  func.func @_qkv_projection_kernel(%arg0: i32, %arg1: memref<16x32xf32, #tpu.memory_space<vmem>>, %arg2: memref<16x32xf32, #tpu.memory_space<vmem>>, %arg3: memref<16x32xf32, #tpu.memory_space<vmem>>, %arg4: memref<32x32xf32, #tpu.memory_space<vmem>>, %arg5: memref<32x32xf32, #tpu.memory_space<vmem>>, %arg6: memref<32x32xf32, #tpu.memory_space<vmem>>, %arg7: memref<1x32xf32, #tpu.memory_space<vmem>>, %arg8: memref<1x32xf32, #tpu.memory_space<vmem>>, %arg9: memref<1x32xf32, #tpu.memory_space<vmem>>, %arg10: memref<16x32xf32, #tpu.memory_space<vmem>>, %arg11: memref<16x32xf32, #tpu.memory_space<vmem>>, %arg12: memref<16x32xf32, #tpu.memory_space<vmem>>) attributes {dimension_semantics = [#tpu.dimension_semantics<parallel>], iteration_bounds = array<i64: 1>, scalar_prefetch = 0 : i64, scratch_operands = 0 : i64, tpu.core_type = #tpu.core_type<tc>, window_params = [{transform_indices = @transform_0, window_bounds = array<i64: 16, 32>}, {transform_indices = @transform_1, window_bounds = array<i64: 16, 32>}, {transform_indices = @transform_2, window_bounds = array<i64: 16, 32>}, {pipeline_mode = #tpu.pipeline_mode<synchronous>, transform_indices = @transform_3, window_bounds = array<i64: 32, 32>}, {pipeline_mode = #tpu.pipeline_mode<synchronous>, transform_indices = @transform_4, window_bounds = array<i64: 32, 32>}, {pipeline_mode = #tpu.pipeline_mode<synchronous>, transform_indices = @transform_5, window_bounds = array<i64: 32, 32>}, {pipeline_mode = #tpu.pipeline_mode<synchronous>, transform_indices = @transform_6, window_bounds = array<i64: 1, 32>}, {pipeline_mode = #tpu.pipeline_mode<synchronous>, transform_indices = @transform_7, window_bounds = array<i64: 1, 32>}, {pipeline_mode = #tpu.pipeline_mode<synchronous>, transform_indices = @transform_8, window_bounds = array<i64: 1, 32>}, {transform_indices = @transform_9, window_bounds = array<i64: 16, 32>}, {transform_indices = @transform_10, window_bounds = array<i64: 16, 32>}, {transform_indices = @transform_11, window_bounds = array<i64: 16, 32>}]} {
    %c0 = arith.constant 0 : index
    %c0_0 = arith.constant 0 : index
    %0 = vector.load %arg1[%c0, %c0_0] : memref<16x32xf32, #tpu.memory_space<vmem>>, vector<16x32xf32>
    %c0_1 = arith.constant 0 : index
    %c0_2 = arith.constant 0 : index
    %1 = vector.load %arg4[%c0_1, %c0_2] : memref<32x32xf32, #tpu.memory_space<vmem>>, vector<32x32xf32>
    %cst = arith.constant dense<0.000000e+00> : vector<16x32xf32>
    %2 = tpu.matmul %0, %1, %cst {dimension_numbers = #tpu.dot_dimension_numbers<[1], [0], [0], [1], [0, 0, 1, 1], [], []>} : vector<16x32xf32>, vector<32x32xf32>, vector<16x32xf32> -> vector<16x32xf32>
    %c0_3 = arith.constant 0 : index
    %c0_4 = arith.constant 0 : index
    %3 = vector.load %arg7[%c0_3, %c0_4] : memref<1x32xf32, #tpu.memory_space<vmem>>, vector<1x32xf32>
    %4 = vector.broadcast %3 : vector<1x32xf32> to vector<16x32xf32>
    %5 = arith.addf %2, %4 : vector<16x32xf32>
    %c0_5 = arith.constant 0 : index
    %c0_6 = arith.constant 0 : index
    %6 = vector.load %arg10[%c0_5, %c0_6] : memref<16x32xf32, #tpu.memory_space<vmem>>, vector<16x32xf32>
    tpu.vector_store %arg10[%c0_5, %c0_6], %5 {strides = array<i32>} : memref<16x32xf32, #tpu.memory_space<vmem>>, vector<16x32xf32>,
    %c0_7 = arith.constant 0 : index
    %c0_8 = arith.constant 0 : index
    %7 = vector.load %arg2[%c0_7, %c0_8] : memref<16x32xf32, #tpu.memory_space<vmem>>, vector<16x32xf32>
    %c0_9 = arith.constant 0 : index
    %c0_10 = arith.constant 0 : index
    %8 = vector.load %arg5[%c0_9, %c0_10] : memref<32x32xf32, #tpu.memory_space<vmem>>, vector<32x32xf32>
    %cst_11 = arith.constant dense<0.000000e+00> : vector<16x32xf32>
    %9 = tpu.matmul %7, %8, %cst_11 {dimension_numbers = #tpu.dot_dimension_numbers<[1], [0], [0], [1], [0, 0, 1, 1], [], []>} : vector<16x32xf32>, vector<32x32xf32>, vector<16x32xf32> -> vector<16x32xf32>
    %c0_12 = arith.constant 0 : index
    %c0_13 = arith.constant 0 : index
    %10 = vector.load %arg8[%c0_12, %c0_13] : memref<1x32xf32, #tpu.memory_space<vmem>>, vector<1x32xf32>
    %11 = vector.broadcast %10 : vector<1x32xf32> to vector<16x32xf32>
    %12 = arith.addf %9, %11 : vector<16x32xf32>
    %c0_14 = arith.constant 0 : index
    %c0_15 = arith.constant 0 : index
    %13 = vector.load %arg11[%c0_14, %c0_15] : memref<16x32xf32, #tpu.memory_space<vmem>>, vector<16x32xf32>
    tpu.vector_store %arg11[%c0_14, %c0_15], %12 {strides = array<i32>} : memref<16x32xf32, #tpu.memory_space<vmem>>, vector<16x32xf32>,
    %c0_16 = arith.constant 0 : index
    %c0_17 = arith.constant 0 : index
    %14 = vector.load %arg3[%c0_16, %c0_17] : memref<16x32xf32, #tpu.memory_space<vmem>>, vector<16x32xf32>
    %c0_18 = arith.constant 0 : index
    %c0_19 = arith.constant 0 : index
    %15 = vector.load %arg6[%c0_18, %c0_19] : memref<32x32xf32, #tpu.memory_space<vmem>>, vector<32x32xf32>
    %cst_20 = arith.constant dense<0.000000e+00> : vector<16x32xf32>
    %16 = tpu.matmul %14, %15, %cst_20 {dimension_numbers = #tpu.dot_dimension_numbers<[1], [0], [0], [1], [0, 0, 1, 1], [], []>} : vector<16x32xf32>, vector<32x32xf32>, vector<16x32xf32> -> vector<16x32xf32>
    %c0_21 = arith.constant 0 : index
    %c0_22 = arith.constant 0 : index
    %17 = vector.load %arg9[%c0_21, %c0_22] : memref<1x32xf32, #tpu.memory_space<vmem>>, vector<1x32xf32>
    %18 = vector.broadcast %17 : vector<1x32xf32> to vector<16x32xf32>
    %19 = arith.addf %16, %18 : vector<16x32xf32>
    %c0_23 = arith.constant 0 : index
    %c0_24 = arith.constant 0 : index
    %20 = vector.load %arg12[%c0_23, %c0_24] : memref<16x32xf32, #tpu.memory_space<vmem>>, vector<16x32xf32>
    tpu.vector_store %arg12[%c0_23, %c0_24], %19 {strides = array<i32>} : memref<16x32xf32, #tpu.memory_space<vmem>>, vector<16x32xf32>,
    return
  }
  func.func @transform_0(%arg0: i32) -> (i32, i32) {
    %c0_i32 = arith.constant 0 : i32
    %c0_i32_0 = arith.constant 0 : i32
    return %arg0, %c0_i32 : i32, i32
  }
  func.func @transform_1(%arg0: i32) -> (i32, i32) {
    %c0_i32 = arith.constant 0 : i32
    %c0_i32_0 = arith.constant 0 : i32
    return %arg0, %c0_i32 : i32, i32
  }
  func.func @transform_2(%arg0: i32) -> (i32, i32) {
    %c0_i32 = arith.constant 0 : i32
    %c0_i32_0 = arith.constant 0 : i32
    return %arg0, %c0_i32 : i32, i32
  }
  func.func @transform_3(%arg0: i32) -> (i32, i32) {
    %c0_i32 = arith.constant 0 : i32
    %c0_i32_0 = arith.constant 0 : i32
    %c0_i32_1 = arith.constant 0 : i32
    return %c0_i32, %c0_i32_0 : i32, i32
  }
  func.func @transform_4(%arg0: i32) -> (i32, i32) {
    %c0_i32 = arith.constant 0 : i32
    %c0_i32_0 = arith.constant 0 : i32
    %c0_i32_1 = arith.constant 0 : i32
    return %c0_i32, %c0_i32_0 : i32, i32
  }
  func.func @transform_5(%arg0: i32) -> (i32, i32) {
    %c0_i32 = arith.constant 0 : i32
    %c0_i32_0 = arith.constant 0 : i32
    %c0_i32_1 = arith.constant 0 : i32
    return %c0_i32, %c0_i32_0 : i32, i32
  }
  func.func @transform_6(%arg0: i32) -> (i32, i32) {
    %c0_i32 = arith.constant 0 : i32
    %c0_i32_0 = arith.constant 0 : i32
    %c0_i32_1 = arith.constant 0 : i32
    return %c0_i32, %c0_i32_0 : i32, i32
  }
  func.func @transform_7(%arg0: i32) -> (i32, i32) {
    %c0_i32 = arith.constant 0 : i32
    %c0_i32_0 = arith.constant 0 : i32
    %c0_i32_1 = arith.constant 0 : i32
    return %c0_i32, %c0_i32_0 : i32, i32
  }
  func.func @transform_8(%arg0: i32) -> (i32, i32) {
    %c0_i32 = arith.constant 0 : i32
    %c0_i32_0 = arith.constant 0 : i32
    %c0_i32_1 = arith.constant 0 : i32
    return %c0_i32, %c0_i32_0 : i32, i32
  }
  func.func @transform_9(%arg0: i32) -> (i32, i32) {
    %c0_i32 = arith.constant 0 : i32
    %c0_i32_0 = arith.constant 0 : i32
    return %arg0, %c0_i32 : i32, i32
  }
  func.func @transform_10(%arg0: i32) -> (i32, i32) {
    %c0_i32 = arith.constant 0 : i32
    %c0_i32_0 = arith.constant 0 : i32
    return %arg0, %c0_i32 : i32, i32
  }
  func.func @transform_11(%arg0: i32) -> (i32, i32) {
    %c0_i32 = arith.constant 0 : i32
    %c0_i32_0 = arith.constant 0 : i32
    return %arg0, %c0_i32 : i32, i32
  }
}

</mosaic_0001>

<bundles_post_ra>
// kernel: tpu_custom_call.1
= control target key start
LH: loop header
LB: loop body
LE: loop exit
PB: predicated region body
PF: predicated region fallthrough
CT: control target
= control target key end

     0   :  { %17 = vsyncpa [#allocation3], 0  ;;  %s710_s0 = inlined_call_operand.hbm [shape: f32[16,32], index: 0, kind: input, shape index: {}]   ;;  %s711_s1 = inlined_call_operand.hbm [shape: f32[16,32], index: 1, kind: input, shape index: {}]   ;;  %s712_s2 = inlined_call_operand.hbm [shape: f32[16,32], index: 2, kind: input, shape index: {}]   ;;  %s713_s3 = inlined_call_operand.hbm [shape: f32[32,32], index: 3, kind: input, shape index: {}]   ;;  %s714_s4 = inlined_call_operand.hbm [shape: f32[32,32], index: 4, kind: input, shape index: {}]   ;;  %s715_s5 = inlined_call_operand.hbm [shape: f32[32,32], index: 5, kind: input, shape index: {}]   ;;  %s716_s6 = inlined_call_operand.vmem [shape: f32[1,32], index: 6, kind: input, shape index: {}]   ;;  %s717_s7 = inlined_call_operand.vmem [shape: f32[1,32], index: 7, kind: input, shape index: {}]   ;;  %s718_s8 = inlined_call_operand.vmem [shape: f32[1,32], index: 8, kind: input, shape index: {}]   ;;  %s719_s9 = inlined_call_operand.hbm [shape: f32[16,32], index: 9, kind: output, shape index: {0}]   ;;  %s720_s10 = inlined_call_operand.hbm [shape: f32[16,32], index: 10, kind: output, shape index: {1}]   ;;  %s721_s11 = inlined_call_operand.hbm [shape: f32[16,32], index: 11, kind: output, shape index: {2}]  }
   0x1   :  { %18 = vsyncpa [#allocation6], 0 }
   0x2   :  { %19 = vsyncpa [#allocation9], 0 }
   0x3   :  { %20 = vsyncpa [#allocation12], 0 }
   0x4   :  { %21 = vsyncpa [#allocation4], 0 }
   0x5   :  { %22 = vsyncpa [#allocation15], 0  ;;  %s40_s19 = sshll.u32 %s711_s1, 4  ;;  %s564_s20 = smov [#allocation5]   ;;  %s41_s19 = int_to_ptr.hbm [resolvable:$true] %s40_s19 }
   0x6   :  { %s42_s21 = sshll.u32 %s564_s20, 4  ;;  %s66_s24 = sshll.u32 %s713_s3, 4  ;;  %s43_s21 = int_to_ptr.vmem [resolvable:$true] %s42_s21  ;;  %s67_s24 = int_to_ptr.hbm [resolvable:$true] %s66_s24 }
   0x7   :  { %s565_s25 = smov 128   ;;  %s566_s26 = smov 8  }
   0x8   :  { %48 = dma.hbm_to_vmem [thread:$0]  %s41_s19, 256, %s43_s21, [#allocation6], %s565_s25, %s565_s25, %s566_s26  }
   0x9   :  { %s567_s27 = smov [#allocation8]   ;;  %s27_s1 = sshll.u32 %s710_s0, 4  ;;  %s28_s1 = int_to_ptr.hbm [resolvable:$true] %s27_s1 }
   0xa   :  { %s68_s28 = sshll.u32 %s567_s27, 4  ;;  %s53_s13 = sshll.u32 %s712_s2, 4  ;;  %s69_s28 = int_to_ptr.vmem [resolvable:$true] %s68_s28  ;;  %s54_s13 = int_to_ptr.hbm [resolvable:$true] %s53_s13 }
   0xb   :  { %74 = dma.hbm_to_vmem [thread:$0]  %s67_s24, 512, %s69_s28, [#allocation9], %s565_s25, %s565_s25, %s566_s26  }
   0xc   :  { %s568_s14 = smov [#allocation2]   ;;  %s569_s16 = smov [#allocation7]  }
   0xd   :  { %s29_s15 = sshll.u32 %s568_s14, 4  ;;  %s55_s0 = sshll.u32 %s569_s16, 4  ;;  %s30_s15 = int_to_ptr.vmem [resolvable:$true] %s29_s15  ;;  %s56_s0 = int_to_ptr.vmem [resolvable:$true] %s55_s0 }
   0xe   :  { %35 = dma.hbm_to_vmem [thread:$0]  %s28_s1, 256, %s30_s15, [#allocation3], %s565_s25, %s565_s25, %s566_s26  }
   0xf   :  { %s79_s19 = sshll.u32 %s714_s4, 4  ;;  %s92_s21 = sshll.u32 %s715_s5, 4  ;;  %s80_s19 = int_to_ptr.hbm [resolvable:$true] %s79_s19  ;;  %s93_s21 = int_to_ptr.hbm [resolvable:$true] %s92_s21 }
  0x10   :  { %61 = dma.hbm_to_vmem [thread:$0]  %s54_s13, 256, %s56_s0, [#allocation6], %s565_s25, %s565_s25, %s566_s26  }
  0x11   :  { %s570_s22 = smov [#allocation10]   ;;  %s571_s24 = smov [#allocation11]  }
  0x12   :  { %s81_s23 = sshll.u32 %s570_s22, 4  ;;  %s94_s4 = sshll.u32 %s571_s24, 4  ;;  %s82_s23 = int_to_ptr.vmem [resolvable:$true] %s81_s23  ;;  %s95_s4 = int_to_ptr.vmem [resolvable:$true] %s94_s4 }
  0x13   :  { %87 = dma.hbm_to_vmem [thread:$0]  %s80_s19, 512, %s82_s23, [#allocation9], %s565_s25, %s565_s25, %s566_s26  }
  0x14   :  { %100 = dma.hbm_to_vmem [thread:$0]  %s93_s21, 512, %s95_s4, [#allocation12], %s565_s25, %s565_s25, %s566_s26  }
  0x15   :  { %552 = dma.done.wait [#allocation3], 256  }
  0x16   :  { %553 = vsyncadd [#allocation3], 4294967040 }
  0x17   :  { %554 = dma.done.wait [#allocation6], 512  }
  0x18   :  { %555 = vsyncadd [#allocation6], 4294966784 }
  0x19   :  { %556 = dma.done.wait [#allocation9], 1024  }
  0x1a   :  { %557 = vsyncadd [#allocation9], 4294966272 }
  0x1b   :  { %558 = dma.done.wait [#allocation12], 512  }
  0x1c   :  { %559 = vsyncadd [#allocation12], 4294966784  ;;  %v219_v0 = vld [vmem:[#allocation11 + $0x18] sm:$0xff]  ;;  %v218_v1 = vld [vmem:[#allocation11 + $0x10] sm:$0xff]  ;;  %vm141_vm0 = vcmask 261120   ;;  %s572_s3 = smov [#allocation13]  }
  0x1d   :  { %242 = vmatpush.msra.mxu2 %v219_v0  ;;  %v178_v2 = vld [vmem:[#allocation10 + $0x18] sm:$0xff]  ;;  %v177_v3 = vld [vmem:[#allocation10 + $0x10] sm:$0xff]  ;;  %v217_v4 = vld [vmem:[#allocation11 + $0x8] sm:$0xff]  ;;  %s259_s12 = sshll.u32 %s572_s3, 4  ;;  %s573_s15 = smov [#allocation14]   ;;  %s260_s12 = int_to_ptr.vmem [resolvable:$true] %s259_s12 }
  0x1e   :  { %201 = vmatpush.msra.mxu1 %v178_v2  ;;  %v136_v5 = vld [vmem:[#allocation8 + $0x18] sm:$0xff]  ;;  %v176_v6 = vld [vmem:[#allocation10 + $0x8] sm:$0xff]  ;;  %v135_v7 = vld [vmem:[#allocation8 + $0x10] sm:$0xff]  ;;  %s272_s16 = sshll.u32 %s573_s15, 4  ;;  %s274_s17 = sshll.u32 %s720_s10, 4  ;;  %s273_s16 = int_to_ptr.vmem [resolvable:$true] %s272_s16  ;;  %s275_s17 = int_to_ptr.hbm [resolvable:$true] %s274_s17 }
  0x1f   :  { %243 = vmatpush.msra.mxu2 %v218_v1  ;;  %318 = vmatpush.msra.mxu3 %v136_v5  ;;  %v216_v8 = vld [vmem:[#allocation11] sm:$0xff]  ;;  %v134_v9 = vld [vmem:[#allocation8 + $0x8] sm:$0xff]  ;;  %v214_v10 = vld [vmem:[#allocation7] sm:$0xff]  ;;  %s287_s10 = sshll.u32 %s721_s11, 4  ;;  %s288_s10 = int_to_ptr.hbm [resolvable:$true] %s287_s10 }
  0x20   :  { %202 = vmatpush.msra.mxu1 %v177_v3  ;;  %160 = vmatpush.msra.mxu0 %v136_v5  ;;  %v175_v11 = vld [vmem:[#allocation10] sm:$0xff]  ;;  %v132_v14 = vld [vmem:[#allocation2 + $0x8] sm:$0xff]  ;;  %v131_v15 = vld [vmem:[#allocation2] sm:$0xff] }
  0x21   :  { %244 = vmatpush.msra.mxu2 %v217_v4  ;;  %319 = vmatpush.msra.mxu3 %v135_v7  ;;  %v173_v12 = vld [vmem:[#allocation5] sm:$0xff]  ;;  %v215_v16 = vld [vmem:[#allocation7 + $0x8] sm:$0xff]  ;;  %v174_v17 = vld [vmem:[#allocation5 + $0x8] sm:$0xff] }
  0x22   :  { %203 = vmatpush.msra.mxu1 %v176_v6  ;;  %v133_v13 = vld [vmem:[#allocation8] sm:$0xff]  ;;  %161 = vmatpush.msra.mxu0 %v135_v7  ;;  %v333_v18 = vld [vmem:[%s717_s7] ss:$0 sm:$0xff]  ;;  %s261_s7 = sshll.u32 %s719_s9, 4  ;;  %s262_s7 = int_to_ptr.hbm [resolvable:$true] %s261_s7 }
  0x23   :  { %245 = vmatpush.msra.mxu2 %v216_v8  ;;  %320 = vmatpush.msra.mxu3 %v134_v9  ;;  %v335_v21 = vld [vmem:[%s716_s6] ss:$0 sm:$0xff] }
  0x24   :  { %316 = vmatmul.msk.f32.vlgmr.msra.gmra.mxu2 %vm141_vm0, %v214_v10  ;;  %204 = vmatpush.msra.mxu1 %v175_v11  ;;  %v334_v22 = vld [vmem:[%s718_s8] ss:$0 sm:$0xff]  ;;  %s574_s8 = smov [#allocation16]  }
  0x25   :  { %314 = vmatmul.msk.f32.vlgmr.msra.gmra.mxu1 %vm141_vm0, %v173_v12  ;;  %321 = vmatpush.msra.mxu3 %v133_v13  ;;  %s285_s9 = sshll.u32 %s574_s8, 4  ;;  %s286_s9 = int_to_ptr.vmem [resolvable:$true] %s285_s9 }
  0x26   :  { %313 = vmatmul.msk.f32.vlgmr.msra.gmra.mxu3 %vm141_vm0, %v132_v14  ;;  %162 = vmatpush.msra.mxu0 %v134_v9 }
  0x28   :  { %163 = vmatpush.msra.mxu0 %v133_v13 }
  0x29   :  { %312 = vmatmul.msk.f32.vlgmr.msra.gmra.mxu0 %vm141_vm0, %v131_v15 }
  0x2c   :  { %317 = vmatmul.msk.f32.gmra.mxu2 %vm141_vm0, %v215_v16 }
  0x2d   :  { %315 = vmatmul.msk.f32.gmra.mxu1 %vm141_vm0, %v174_v17 }
  0xa2   :  { %v206_v19 = vpop.f32.mrf.mxu1 }
  0xa3   :  { %v207_v20 = vadd.f32 %v333_v18, %v206_v19 }
  0xa5   :  { %212 = vst.msk [vmem:[#allocation14] sm:$0xff] %vm141_vm0, %v207_v20 }
  0xa6   :  { %v165_v23 = vpop.f32.mrf.mxu0 }
  0xa7   :  { %v247_v24 = vpop.f32.mrf.mxu2  ;;  %v166_v25 = vadd.f32 %v335_v21, %v165_v23 }
  0xa8   :  { %v248_v26 = vadd.f32 %v334_v22, %v247_v24 }
  0xa9   :  { %171 = vst.msk [vmem:[#allocation13] sm:$0xff] %vm141_vm0, %v166_v25  ;;  %v168_v27 = vpop.f32.mrf.mxu3 }
  0xaa   :  { %253 = vst.msk [vmem:[#allocation16] sm:$0xff] %vm141_vm0, %v248_v26  ;;  %v209_v28 = vpop.f32.mrf.mxu1  ;;  %v169_v29 = vadd.f32 %v335_v21, %v168_v27 }
  0xab   :  { %v210_v30 = vadd.f32 %v333_v18, %v209_v28 }
  0xac   :  { %172 = vst.msk [vmem:[#allocation13 + $0x8] sm:$0xff] %vm141_vm0, %v169_v29 }
  0xad   :  { %213 = vst.msk [vmem:[#allocation14 + $0x8] sm:$0xff] %vm141_vm0, %v210_v30  ;;  %267 = dma.vmem_to_hbm [thread:$0]  %s260_s12, 256, %s262_s7, [#allocation4], %s565_s25, %s565_s25, %s566_s26  }
  0xae   :  { %280 = dma.vmem_to_hbm [thread:$0]  %s273_s16, 256, %s275_s17, [#allocation15], %s565_s25, %s565_s25, %s566_s26  }
  0xaf   :  { %v250_v31 = vpop.f32.mrf.mxu2 }
  0xb0   :  { %v251_v32 = vadd.f32 %v334_v22, %v250_v31 }
  0xb2   :  { %254 = vst.msk [vmem:[#allocation16 + $0x8] sm:$0xff] %vm141_vm0, %v251_v32 }
  0xb3   :  { %293 = dma.vmem_to_hbm [thread:$0]  %s286_s9, 256, %s288_s10, [#allocation15], %s565_s25, %s565_s25, %s566_s26  }
  0xb4   :  { %560 = dma.done.wait [#allocation4], 256  }
  0xb5   :  { %561 = vsyncadd [#allocation4], 4294967040 }
  0xb6   :  { %562 = dma.done.wait [#allocation15], 512  }
  0xb7   :  { %563 = vsyncadd [#allocation15], 4294966784 }
  0xb8   :  { %306 = vsyncpa [#allocation3], 1 }
  0xb9   :  { %307 = vsyncpa [#allocation6], 1 }
  0xba   :  { %308 = vsyncpa [#allocation9], 1 }
  0xbb   :  { %309 = vsyncpa [#allocation12], 1 }
  0xbc   :  { %310 = vsyncpa [#allocation4], 1 }
  0xbd   :  { %311 = vsyncpa [#allocation15], 1 }

</bundles_post_ra>
